<compile_context>
chip_gen: v7x
topology: tpu7x:2x2x1
jax: 0.10.0
libtpu: 0.0.40
codegen_flags: <defaults>
</compile_context>

<pallas_src>
import functools

import jax
import jax.numpy as jnp
from jax.experimental import pallas as pl
from jax.experimental.pallas import tpu as pltpu


# ---------------------------------------------------------------------------
# VMEM-aware tile sizing
# ---------------------------------------------------------------------------
def _vmem_capacity_bytes() -> int:
    try:
        info = pltpu.get_tpu_info()
        cap = getattr(info, "vmem_capacity_bytes", None)
        if cap:
            return int(cap)
    except Exception:
        pass
    # Fallback: key off the device kind (v5e/v6e have 128 MiB VMEM per core,
    # v7x has 64 MiB).  Default conservatively to 64 MiB.
    try:
        kind = jax.devices()[0].device_kind.lower()
        if "v5" in kind or "v6" in kind:
            return 128 * 1024 * 1024
    except Exception:
        pass
    return 64 * 1024 * 1024


def _round_up(x: int, m: int) -> int:
    return -(-x // m) * m


def _round_down(x: int, m: int) -> int:
    return (x // m) * m


_VMEM_CAP = _vmem_capacity_bytes()
# Raise the scoped VMEM limit above the 16/32 MiB defaults, keep headroom.
_VMEM_LIMIT = min(int(_VMEM_CAP) * 3 // 4, 96 * 1024 * 1024)
# Live VMEM ~= 2x in + 2x out double buffers + ~3 f32 temporaries (upcast, xc).
_TILE_BUDGET = _VMEM_LIMIT // 7
# Byte cap per pipeline buffer: big enough to amortize the ~0.35 us/step grid
# overhead, small enough to stay well inside the 48 MiB scoped limit on v7x.
_PER_BUFFER_CAP = min(_TILE_BUDGET, 4 * 1024 * 1024)


def _pick_row_tile(rows: int, c: int, itemsize: int) -> int:
    """channels_last row tile: dtype-native sublane multiple, byte-capped, and
    capped at ceil(rows/4) so dual-TC parts keep >= 2 steps per core."""
    mult = max(8, 32 // max(itemsize, 1))          # 8 f32 / 16 bf16 / 32 int8
    if rows <= mult:
        return rows                                # full extent is always legal
    row_vmem_bytes = _round_up(c, 128) * itemsize  # lane padding included
    tile = _PER_BUFFER_CAP // max(row_vmem_bytes, 1)
    quarter = _round_up(-(-rows // 4), mult)       # >= 4 grid steps when possible
    tile = min(tile, quarter)
    tile = max(mult, _round_down(tile, mult))
    tile = min(tile, _round_down(rows, mult))      # tail handled by cdiv/masking
    return max(tile, mult)


def _pick_spatial_tile(spatial: int, c: int, itemsize: int, batch: int) -> int:
    """channels_first lane (spatial) tile: always a 128-multiple bounded by the
    VMEM budget; the remainder becomes a masked partial tail block."""
    if spatial <= 128:
        return spatial                              # single (possibly partial) block
    col_vmem_bytes = _round_up(c, 8) * itemsize     # sublane padding included
    tile = _PER_BUFFER_CAP // max(col_vmem_bytes, 1)
    # Target >= 4 total grid steps (2 per TensorCore on dual-core parts).
    want_steps = max(1, -(-4 // max(batch, 1)))
    cap = _round_up(-(-spatial // want_steps), 128)
    tile = min(tile, cap)
    tile = max(128, _round_down(tile, 128))
    tile = min(tile, _round_down(spatial, 128))     # tail handled by cdiv/masking
    return max(tile, 128)


# ---------------------------------------------------------------------------
# Kernels
# ---------------------------------------------------------------------------
def _ln_rows_kernel(x_ref, w_ref, b_ref, o_ref, *, eps):
    # x_ref: (TR, C) -- normalize each row over the lane axis.
    x = x_ref[...].astype(jnp.float32)
    inv_n = 1.0 / x.shape[-1]
    mean = jnp.sum(x, axis=-1, keepdims=True) * inv_n
    xc = x - mean                          # two-pass variance: no cancellation
    var = jnp.sum(xc * xc, axis=-1, keepdims=True) * inv_n
    inv = jax.lax.rsqrt(var + eps)
    w = w_ref[...].astype(jnp.float32)     # (1, C) broadcasts over rows
    b = b_ref[...].astype(jnp.float32)
    o_ref[...] = (xc * inv * w + b).astype(o_ref.dtype)


def _ln_cf_kernel(x_ref, w_ref, b_ref, o_ref, *, eps):
    # x_ref: (1, C, TS) -- channels on the sublane axis, spatial on lanes.
    x = x_ref[...].astype(jnp.float32)
    inv_n = 1.0 / x.shape[1]
    mean = jnp.sum(x, axis=1, keepdims=True) * inv_n
    xc = x - mean
    var = jnp.sum(xc * xc, axis=1, keepdims=True) * inv_n
    inv = jax.lax.rsqrt(var + eps)
    w = w_ref[...].astype(jnp.float32)     # (1, C, 1) broadcasts over lanes
    b = b_ref[...].astype(jnp.float32)
    o_ref[...] = (xc * inv * w + b).astype(o_ref.dtype)


# ---------------------------------------------------------------------------
# pallas_call wrappers
# ---------------------------------------------------------------------------
def _ln_rows(x2d, w2d, b2d, eps):
    rows, c = int(x2d.shape[0]), int(x2d.shape[1])
    tr = _pick_row_tile(rows, c, x2d.dtype.itemsize)
    grid = (pl.cdiv(rows, tr),)
    return pl.pallas_call(
        functools.partial(_ln_rows_kernel, eps=eps),
        out_shape=jax.ShapeDtypeStruct((rows, c), x2d.dtype),
        grid_spec=pltpu.PrefetchScalarGridSpec(
            num_scalar_prefetch=0,
            grid=grid,
            in_specs=[
                pl.BlockSpec((tr, c), lambda i: (i, 0)),
                pl.BlockSpec((1, c), lambda i: (0, 0)),
                pl.BlockSpec((1, c), lambda i: (0, 0)),
            ],
            out_specs=pl.BlockSpec((tr, c), lambda i: (i, 0)),
        ),
        compiler_params=pltpu.CompilerParams(
            dimension_semantics=("parallel",),
            vmem_limit_bytes=_VMEM_LIMIT,
        ),
    )(x2d, w2d, b2d)


def _ln_channels_first(x, w3, b3, eps):
    n, c = int(x.shape[0]), int(x.shape[1])
    spatial = 1
    for d in x.shape[2:]:
        spatial *= int(d)
    spatial = max(spatial, 1)
    x3 = x.reshape(n, c, spatial)                  # free reshape, NO transpose
    ts = _pick_spatial_tile(spatial, c, x.dtype.itemsize, n)
    grid = (n, pl.cdiv(spatial, ts))
    out = pl.pallas_call(
        functools.partial(_ln_cf_kernel, eps=eps),
        out_shape=jax.ShapeDtypeStruct((n, c, spatial), x.dtype),
        grid_spec=pltpu.PrefetchScalarGridSpec(
            num_scalar_prefetch=0,
            grid=grid,
            in_specs=[
                pl.BlockSpec((1, c, ts), lambda i, j: (i, 0, j)),
                pl.BlockSpec((1, c, 1), lambda i, j: (0, 0, 0)),
                pl.BlockSpec((1, c, 1), lambda i, j: (0, 0, 0)),
            ],
            out_specs=pl.BlockSpec((1, c, ts), lambda i, j: (i, 0, j)),
        ),
        compiler_params=pltpu.CompilerParams(
            dimension_semantics=("parallel", "parallel"),
            vmem_limit_bytes=_VMEM_LIMIT,
        ),
    )(x3, w3, b3)
    return out.reshape(x.shape)


# ---------------------------------------------------------------------------
# Module
# ---------------------------------------------------------------------------
class LayerNorm:
    """JAX/Pallas port of the ConvNeXt LayerNorm module (forward only)."""

    def __init__(self, normalized_shape: int, eps: float = 1e-6,
                 data_format: str = "channels_last"):
        if data_format not in ("channels_last", "channels_first"):
            raise ValueError(f"not support data format '{data_format}'")
        c = int(normalized_shape)
        self.weight = jnp.ones((c,), dtype=jnp.float32)
        self.bias = jnp.zeros((c,), dtype=jnp.float32)
        self.eps = float(eps)
        self.data_format = data_format
        self.normalized_shape = (c,)
        # Cached broadcast-ready parameter views (avoid per-call reshapes).
        self._w_row = self.weight.reshape(1, c)
        self._b_row = self.bias.reshape(1, c)
        self._w_cf = self.weight.reshape(1, c, 1)
        self._b_cf = self.bias.reshape(1, c, 1)

    def __call__(self, x: jax.Array) -> jax.Array:
        c = self.normalized_shape[0]
        if self.data_format == "channels_last":
            orig_shape = x.shape
            assert int(orig_shape[-1]) == c
            rows = 1
            for d in orig_shape[:-1]:
                rows *= int(d)
            rows = max(rows, 1)
            y2d = _ln_rows(x.reshape(rows, c), self._w_row, self._b_row, self.eps)
            return y2d.reshape(orig_shape)
        else:  # channels_first (N, C, *spatial)
            assert int(x.shape[1]) == c
            return _ln_channels_first(x, self._w_cf, self._b_cf, self.eps)


# ---------------------------------------------------------------------------
# Pure-JAX references & self-test
# ---------------------------------------------------------------------------
def _ref_channels_first(x, w, b, eps):
    x = x.astype(jnp.float32)
    mean = jnp.mean(x, axis=1, keepdims=True)
    var = jnp.mean((x - mean) ** 2, axis=1, keepdims=True)
    xn = (x - mean) / jnp.sqrt(var + eps)
    shape = (1, -1) + (1,) * (x.ndim - 2)
    return w.reshape(shape) * xn + b.reshape(shape)


def _ref_channels_last(x, w, b, eps):
    x = x.astype(jnp.float32)
    mean = jnp.mean(x, axis=-1, keepdims=True)
    var = jnp.mean((x - mean) ** 2, axis=-1, keepdims=True)
    xn = (x - mean) / jnp.sqrt(var + eps)
    return xn * w + b


if __name__ == "__main__":
    key = jax.random.PRNGKey(0)
    k1, k2, k3, k4, k5 = jax.random.split(key, 5)

    # channels_first: NCHW input (ConvNeXt stem / downsample norms).
    x_cf = jax.random.normal(k1, (2, 4, 16, 16), dtype=jnp.float32)
    ln_cf = LayerNorm(4, eps=1e-6, data_format="channels_first")
    y_cf = jax.block_until_ready(ln_cf(x_cf))
    ref_cf = _ref_channels_first(x_cf, ln_cf.weight, ln_cf.bias, ln_cf.eps)
    assert y_cf.shape == x_cf.shape and y_cf.dtype == x_cf.dtype
    assert jnp.allclose(y_cf, ref_cf, atol=1e-5, rtol=1e-5)

    # channels_first with spatial NOT a multiple of 128 (masked lane tail).
    x_cf2 = jax.random.normal(k2, (1, 4, 15, 15), dtype=jnp.float32)
    y_cf2 = jax.block_until_ready(ln_cf(x_cf2))
    ref_cf2 = _ref_channels_first(x_cf2, ln_cf.weight, ln_cf.bias, ln_cf.eps)
    assert y_cf2.shape == x_cf2.shape and y_cf2.dtype == x_cf2.dtype
    assert jnp.allclose(y_cf2, ref_cf2, atol=1e-5, rtol=1e-5)

    # channels_last with tiny C.
    x_cl = jax.random.normal(k3, (2, 16, 16, 4), dtype=jnp.float32)
    ln_cl = LayerNorm(4, eps=1e-6, data_format="channels_last")
    y_cl = jax.block_until_ready(ln_cl(x_cl))
    ref_cl = _ref_channels_last(x_cl, ln_cl.weight, ln_cl.bias, ln_cl.eps)
    assert y_cl.shape == x_cl.shape and y_cl.dtype == x_cl.dtype
    assert jnp.allclose(y_cl, ref_cl, atol=1e-5, rtol=1e-5)

    # channels_last with ConvNeXt-like C (f32).
    x_big = jax.random.normal(k4, (2, 8, 8, 96), dtype=jnp.float32)
    ln_big = LayerNorm(96, eps=1e-6, data_format="channels_last")
    y_big = jax.block_until_ready(ln_big(x_big))
    ref_big = _ref_channels_last(x_big, ln_big.weight, ln_big.bias, ln_big.eps)
    assert y_big.shape == x_big.shape and y_big.dtype == x_big.dtype
    assert jnp.allclose(y_big, ref_big, atol=1e-5, rtol=1e-5)

    # channels_last, bf16 input (exercises the 16-row sublane-native tiling).
    x_bf = jax.random.normal(k5, (2, 8, 8, 96), dtype=jnp.float32).astype(jnp.bfloat16)
    y_bf = jax.block_until_ready(ln_big(x_bf))
    ref_bf = _ref_channels_last(x_bf, ln_big.weight, ln_big.bias, ln_big.eps)
    assert y_bf.shape == x_bf.shape and y_bf.dtype == x_bf.dtype
    assert jnp.allclose(y_bf.astype(jnp.float32), ref_bf, atol=5e-2, rtol=5e-2)

    print("KERNEL_OK")
</pallas_src>

<mosaic_0001>
module attributes {stable_mosaic.version = 11 : i64} {
  func.func @_ln_cf_kernel(%arg0: i32, %arg1: i32, %arg2: memref<1x4x128xf32, #tpu.memory_space<vmem>>, %arg3: memref<1x4x1xf32, #tpu.memory_space<vmem>>, %arg4: memref<1x4x1xf32, #tpu.memory_space<vmem>>, %arg5: memref<1x4x128xf32, #tpu.memory_space<vmem>>) attributes {dimension_semantics = [#tpu.dimension_semantics<parallel>, #tpu.dimension_semantics<parallel>], iteration_bounds = array<i64: 2, 2>, scalar_prefetch = 0 : i64, scratch_operands = 0 : i64, tpu.core_type = #tpu.core_type<tc>, window_params = [{transform_indices = @transform_0, window_bounds = array<i64: 1, 4, 128>}, {pipeline_mode = #tpu.pipeline_mode<synchronous>, transform_indices = @transform_1, window_bounds = array<i64: 1, 4, 1>}, {pipeline_mode = #tpu.pipeline_mode<synchronous>, transform_indices = @transform_2, window_bounds = array<i64: 1, 4, 1>}, {transform_indices = @transform_3, window_bounds = array<i64: 1, 4, 128>}]} {
    %c0 = arith.constant 0 : index
    %c0_0 = arith.constant 0 : index
    %c0_1 = arith.constant 0 : index
    %0 = vector.load %arg2[%c0, %c0_0, %c0_1] : memref<1x4x128xf32, #tpu.memory_space<vmem>>, vector<1x4x128xf32>
    %cst = arith.constant dense<0.000000e+00> : vector<1x128xf32>
    %1 = vector.multi_reduction <add>, %0, %cst [1] : vector<1x4x128xf32> to vector<1x128xf32>
    %2 = vector.shape_cast %1 : vector<1x128xf32> to vector<1x1x128xf32>
    %cst_2 = arith.constant 2.500000e-01 : f32
    %3 = vector.broadcast %cst_2 : f32 to vector<1x1x128xf32>
    %4 = arith.mulf %2, %3 : vector<1x1x128xf32>
    %5 = vector.broadcast %4 : vector<1x1x128xf32> to vector<1x4x128xf32>
    %6 = arith.subf %0, %5 : vector<1x4x128xf32>
    %7 = arith.mulf %6, %6 : vector<1x4x128xf32>
    %cst_3 = arith.constant dense<0.000000e+00> : vector<1x128xf32>
    %8 = vector.multi_reduction <add>, %7, %cst_3 [1] : vector<1x4x128xf32> to vector<1x128xf32>
    %9 = vector.shape_cast %8 : vector<1x128xf32> to vector<1x1x128xf32>
    %cst_4 = arith.constant 2.500000e-01 : f32
    %10 = vector.broadcast %cst_4 : f32 to vector<1x1x128xf32>
    %11 = arith.mulf %9, %10 : vector<1x1x128xf32>
    %cst_5 = arith.constant 9.99999997E-7 : f32
    %12 = vector.broadcast %cst_5 : f32 to vector<1x1x128xf32>
    %13 = arith.addf %11, %12 : vector<1x1x128xf32>
    %14 = math.rsqrt %13 : vector<1x1x128xf32>
    %c0_6 = arith.constant 0 : index
    %c0_7 = arith.constant 0 : index
    %c0_8 = arith.constant 0 : index
    %15 = vector.load %arg3[%c0_6, %c0_7, %c0_8] : memref<1x4x1xf32, #tpu.memory_space<vmem>>, vector<1x4x1xf32>
    %c0_9 = arith.constant 0 : index
    %c0_10 = arith.constant 0 : index
    %c0_11 = arith.constant 0 : index
    %16 = vector.load %arg4[%c0_9, %c0_10, %c0_11] : memref<1x4x1xf32, #tpu.memory_space<vmem>>, vector<1x4x1xf32>
    %17 = vector.broadcast %14 : vector<1x1x128xf32> to vector<1x4x128xf32>
    %18 = arith.mulf %6, %17 : vector<1x4x128xf32>
    %19 = vector.broadcast %15 : vector<1x4x1xf32> to vector<1x4x128xf32>
    %20 = arith.mulf %18, %19 : vector<1x4x128xf32>
    %21 = vector.broadcast %16 : vector<1x4x1xf32> to vector<1x4x128xf32>
    %22 = arith.addf %20, %21 : vector<1x4x128xf32>
    %c0_12 = arith.constant 0 : index
    %c0_13 = arith.constant 0 : index
    %c0_14 = arith.constant 0 : index
    %23 = vector.load %arg5[%c0_12, %c0_13, %c0_14] : memref<1x4x128xf32, #tpu.memory_space<vmem>>, vector<1x4x128xf32>
    tpu.vector_store %arg5[%c0_12, %c0_13, %c0_14], %22 {strides = array<i32>} : memref<1x4x128xf32, #tpu.memory_space<vmem>>, vector<1x4x128xf32>,
    return
  }
  func.func @transform_0(%arg0: i32, %arg1: i32) -> (i32, i32, i32) {
    %c0_i32 = arith.constant 0 : i32
    %c0_i32_0 = arith.constant 0 : i32
    return %arg0, %c0_i32, %arg1 : i32, i32, i32
  }
  func.func @transform_1(%arg0: i32, %arg1: i32) -> (i32, i32, i32) {
    %c0_i32 = arith.constant 0 : i32
    %c0_i32_0 = arith.constant 0 : i32
    %c0_i32_1 = arith.constant 0 : i32
    %c0_i32_2 = arith.constant 0 : i32
    return %c0_i32, %c0_i32_0, %c0_i32_1 : i32, i32, i32
  }
  func.func @transform_2(%arg0: i32, %arg1: i32) -> (i32, i32, i32) {
    %c0_i32 = arith.constant 0 : i32
    %c0_i32_0 = arith.constant 0 : i32
    %c0_i32_1 = arith.constant 0 : i32
    %c0_i32_2 = arith.constant 0 : i32
    return %c0_i32, %c0_i32_0, %c0_i32_1 : i32, i32, i32
  }
  func.func @transform_3(%arg0: i32, %arg1: i32) -> (i32, i32, i32) {
    %c0_i32 = arith.constant 0 : i32
    %c0_i32_0 = arith.constant 0 : i32
    return %arg0, %c0_i32, %arg1 : i32, i32, i32
  }
}

</mosaic_0001>

<bundles_post_ra>
// kernel: tpu_custom_call.1
= control target key start
LH: loop header
LB: loop body
LE: loop exit
PB: predicated region body
PF: predicated region fallthrough
CT: control target
= control target key end

     0   :  { %8 = vsyncpa [#allocation3], 0  ;;  %s797_s0 = inlined_call_operand.hbm [shape: f32[2,4,256], index: 0, kind: input, shape index: {}]   ;;  %s798_s1 = inlined_call_operand.vmem [shape: f32[1,4,1], index: 1, kind: input, shape index: {}]   ;;  %s799_s2 = inlined_call_operand.vmem [shape: f32[1,4,1], index: 2, kind: input, shape index: {}]   ;;  %s800_s3 = inlined_call_operand.hbm [shape: f32[2,4,256], index: 3, kind: output, shape index: {}]  }
   0x1   :  { %10 = vsyncpa [#allocation3 + $0x1], 0 }
   0x2   :  { %11 = vsyncpa [#allocation4], 0 }
   0x3   :  { %13 = vsyncpa [#allocation4 + $0x1], 0  ;;  %s593_s12 = smov 0   ;;  %s595_s13 = smov 0  }
   0x4   :  { %s597_s14 = smov 0   ;;  %s599_s15 = smov 0  }
   0x5   :  { %s601_s16 = smov 0   ;;  %s603_s17 = smov 0  }
   0x6   :  { %s605_s18 = smov 0   ;;  %s607_s19 = smov 0  }
   0x7 LB: > { %s343_s20 = sadd.s32 4294967295, %s568_s19   ;;  %s344_s21 = sadd.s32 4294967294, %s568_s19   ;;  %s568_s19 = sphi %s607_s19, %s19_s19   ;;  %s564_s18 = sphi %s605_s18, %s817_s18   ;;  %s560_s17 = sphi %s603_s17, %s816_s17   ;;  %s556_s16 = sphi %s601_s16, %s815_s16   ;;  %s552_s15 = sphi %s599_s15, %s814_s15   ;;  %s548_s14 = sphi %s597_s14, %s813_s14   ;;  %s544_s13 = sphi %s595_s13, %s812_s13   ;;  %s540_s12 = sphi %s593_s12, %s811_s12  }
   0x8   : > { %s28_s22 = sadd.s32 1, %s560_s17  ;;  %s31_s23 = sadd.s32 1, %s564_s18 }
   0x9   : > { %p29_p0 = scmp.ge.s32.totalorder %s28_s22, 2  ;;  %s40_s24 = sadd.s32 1, %s548_s14 }
   0xa   : > { %p47_p1 = scmp.ne.s32.totalorder %s548_s14, %s544_s13  ;;  %p48_p2 = scmp.eq.s32.totalorder %s568_s19, 0 }
   0xb   : > { %s819_s22 = smov (%p29_p0, %s28_s22), 0  ;;  %s821_s23 = smov (!%p29_p0, %s31_s23), %s564_s18 }
   0xc   : > { %s36_s25 = ssub.s32 %s560_s17, %s819_s22  ;;  %p646_p3 = por %p48_p2, %p47_p1 }
   0xd   : > { %p33_p4 = scmp.ge.s32.totalorder %s821_s23, 2  ;;  %p53_p5 = scmp.ne.s32.totalorder %s544_s13, %s540_s12 }
   0xe   : > { %p54_p6 = scmp.eq.s32.totalorder %s343_s20, 0  ;;  %p121_p7 = scmp.eq.s32.totalorder %s343_s20, 3 }
   0xf   : > { %s823_s23 = smov (%p33_p4, %s821_s23), 0  ;;  %p127_p10 = scmp.eq.s32.totalorder %s344_s21, 3 }
  0x10   : > { %p654_p8 = por %p54_p6, %p53_p5  ;;  %p658_p9 = por %p121_p7, %p47_p1 }
  0x11   : > { %s35_s29 = ssub.s32 %s564_s18, %s823_s23  ;;  %p664_p12 = por %p127_p10, %p53_p5 }
  0x12   : > { %s804_s28 = scalar_select %p658_p9, 1, 0 }
  0x13   : > { %s37_s30 = sor.u32 %s36_s25, %s35_s29  ;;  %p370_p13 = scmp.lt.s32.totalorder %s568_s19, 4 }
  0x14   : > { %p38_p11 = scmp.eq.s32.totalorder %s37_s30, 0  ;;  %s153_s5 = sand.u32 1, %s548_s14  }
  0x15   : > { %s805_s4 = scalar_select %p664_p12, 1, 0 }
  0x16   : > { %s671_s6 = scalar_select %p38_p11, %s548_s14, %s40_s24  }
  0x17   : > { %s347_s7 = sshll.u32 %s153_s5, 2  ;;  %s348_s8 = sshll.u32 %s564_s18, 1 }
  0x18   : > { %s162_s9 = sadd.s32 %s560_s17, %s348_s8  ;;  %s157_s10 = scalar_lea.vmem [#allocation2], %s347_s7 }
  0x19   : > { %s166_s11 = sshll.u32 %s157_s10, 4  ;;  %s349_s20 = sshll.u32 %s162_s9, 6  ;;  %s675_s11 = int_to_ptr.vmem [resolvable:$true] %s166_s11 }
  0x1a   : > { %s680_s29 = scalar_lea.hbm %s797_s0, %s349_s20  ;;  %p684_p0 = pnand %p370_p13, %p646_p3 }
  0x1b   : > { %s154_s30 = scalar_lea.sflag [#allocation3], %s153_s5  ;;  %s440_s7 = scalar_lea.hbm %s680_s29, 64 }
  0x1c   : > { %p441_p4 = scmp.ne.s32.totalorder %s680_s29, %s440_s7  ;;  %p442_p5 = pneg %p684_p0 }
  0x1d   : > { %s445_s9 = scalar_lea.hbm %s797_s0, 256  ;;  %p446_p3 = scmp.lt.u32.totalorder %s680_s29, %s797_s0 }
  0x1e   : > { %p443_p6 = pnand %p442_p5, %p441_p4  ;;  %p447_p10 = scmp.lt.u32.totalorder %s445_s9, %s440_s7 }
  0x1f   : > { %p449_p13 = scmp.lt.u32.totalorder %s440_s7, %s680_s29 }
  0x20   : > { %p444_p7 = pneg %p443_p6  ;;  %p448_p11 = por %p447_p10, %p446_p3 }
  0x22   : > { %p450_p1 = por %p449_p13, %p448_p11 }
  0x24   : > { %p451_p2 = pnand %p450_p1, %p444_p7 }
  0x26   : > { %454 = shalt.err (!%p451_p2)
}
  0x27   : > { %s455_s5 = scalar_lea.vmem %s675_s11, 64  ;;  %s570_s21 = smov [#allocation2]  }
  0x28   : > { %p456_p4 = scmp.ne.s32.totalorder %s675_s11, %s455_s5  ;;  %s460_s25 = sshll.u32 %s570_s21, 4  ;;  %s461_s25 = int_to_ptr.vmem [resolvable:$false] %s460_s25 }
  0x29   : > { %s462_s26 = scalar_lea.vmem %s461_s25, 128  ;;  %p463_p9 = scmp.lt.s32.totalorder %s675_s11, %s461_s25 }
  0x2a   : > { %p458_p6 = pnand %p456_p4, %p442_p5  ;;  %p464_p3 = scmp.lt.s32.totalorder %s462_s26, %s455_s5 }
  0x2c   : > { %p459_p12 = pneg %p458_p6  ;;  %p465_p10 = por %p464_p3, %p463_p9 }
  0x2e   : > { %p466_p11 = pnand %p465_p10, %p459_p12 }
  0x30   : > { %469 = shalt.err (!%p466_p11)
}
  0x31   : > { %365 = dma.hbm_to_vmem [thread:$0]  (!%p684_p0), %s680_s29, 64, %s675_s11, %s154_s30  }
  0x32   : > { %p807_p1 = scmp.lt.s32.totalorder %s568_s19, 5  ;;  %p808_p2 = scmp.ge.s32.totalorder %s568_s19, 1 }
  0x34   : > { %p172_p5 = pnand %p808_p2, %p807_p1 }
  0x35   : > { %s720_s7 = sand.u32 (!%p172_p5), 1, %s544_s13  }
  0x36   : > { %175 = sbr.rel (%p172_p5) target bundleno = 212 (0xd4), region = 32  ;;  %s351_s8 = sshll.u32 (!%p172_p5), %s720_s7, 2 }
  0x37   : > { %s178_s9 = scalar_lea.sflag (!%p172_p5), [#allocation3], %s720_s7  ;;  %s181_s24 = scalar_lea.vmem (!%p172_p5), [#allocation2], %s351_s8 }
  0x3d   : > { %531 = dma.done.wait (%p654_p8), %s178_s9, 64  }
  0x3e   : > { %533 = vsyncadd (%p654_p8), %s178_s9, 4294967232  ;;  %v571_v0 = vmov 0   ;;  %v226_v1 = vld [vmem:[%s798_s1] sm:$0xf]  ;;  %vm205_vm0 = vcmask 1043456   ;;  %s354_s27 = sshll.u32 %s556_s16, 1 }
  0x3f   : > { %437 = vset.pattern.permute.xlu0 %v571_v0  ;;  %v227_v2 = vld [vmem:[%s799_s2] sm:$0xf]  ;;  %s254_s20 = sadd.s32 %s552_s15, %s354_s27  ;;  %s203_s21 = scalar_lea.vmem [#allocation5], %s351_s8 }
  0x40   : > { %231 = vperm.xlu0 %437, %v226_v1   ;;  %v204_v3 = vld [vmem:[%s181_s24] sm:$0xf]  ;;  %s355_s5 = sshll.u32 %s254_s20, 6  ;;  %s258_s25 = sshll.u32 %s203_s21, 4  ;;  %s745_s25 = int_to_ptr.vmem [resolvable:$true] %s258_s25 }
  0x41   : > { %v206_v4 = vsel %vm205_vm0, %v204_v3, 0.0  ;;  %s743_s24 = scalar_lea.hbm %s800_s3, %s355_s5  ;;  %s243_s15 = scalar_lea.sflag [#allocation4], %s720_s7 }
  0x42   : > { %v207_v5 = vrot.slane %v206_v4, 4  ;;  %s470_s16 = scalar_lea.vmem %s745_s25, 64  ;;  %p809_p9 = scmp.ne.s32.totalorder %s804_s28, 0 }
  0x43   : > { %p471_p8 = scmp.ne.s32.totalorder %s745_s25, %s470_s16  ;;  %s572_s8 = smov [#allocation5]  }
  0x44   : > { %237 = vperm.xlu0 %437, %v227_v2   ;;  %v208_v6 = vadd.f32 %v207_v5, %v206_v4  ;;  %s474_s11 = sshll.u32 %s572_s8, 4  ;;  %s475_s11 = int_to_ptr.vmem [resolvable:$false] %s474_s11 }
  0x45   : > { %p472_p12 = pnand %p471_p8, %p809_p9  ;;  %s476_s29 = scalar_lea.vmem %s475_s11, 128 }
  0x46   : > { %v209_v7 = vrot.slane %v208_v6, 2  ;;  %p477_p7 = scmp.lt.s32.totalorder %s745_s25, %s475_s11  ;;  %p478_p13 = scmp.lt.s32.totalorder %s476_s29, %s470_s16 }
  0x47   : > { %p473_p0 = pneg %p472_p12 }
  0x48   : > { %v210_v8 = vadd.f32 %v209_v7, %v208_v6  ;;  %p479_p4 = por %p478_p13, %p477_p7 }
  0x4a   : > { %v211_v9 = vrot.slane %v210_v8, 1  ;;  %p480_p6 = pnand %p479_p4, %p473_p0 }
  0x4c   : > { %v212_v10 = vadd.f32 %v211_v9, %v210_v8 }
  0x4e   : > { %v213_v11 = vmul.f32 0.25, %v212_v10 }
  0x50   : > { %v214_v12 = vsub.f32 %v204_v3, %v213_v11 }
  0x52   : > { %v215_v13 = vmul.f32 %v214_v12, %v214_v12 }
  0x54   : > { %v216_v14 = vsel %vm205_vm0, %v215_v13, 0.0 }
  0x55   : > { %v217_v15 = vrot.slane %v216_v14, 4 }
  0x57   : > { %v218_v16 = vadd.f32 %v217_v15, %v216_v14 }
  0x59   : > { %v219_v17 = vrot.slane %v218_v16, 2 }
  0x5b   : > { %v220_v18 = vadd.f32 %v219_v17, %v218_v16 }
  0x5d   : > { %v221_v19 = vrot.slane %v220_v18, 1 }
  0x5f   : > { %v222_v20 = vadd.f32 %v221_v19, %v220_v18 }
  0x61   : > { %v223_v21 = vmul.f32 0.25, %v222_v20 }
  0x63   : > { %v224_v22 = vadd.f32 1e-06, %v223_v21 }
  0x65   : > { %438 = vrsqrt.f32 %v224_v22 }
  0x6f   : > { %v439_v23 = vpop.eup %438 }
  0x70   : > { %v228_v24 = vmul.f32 %v439_v23, %v214_v12 }
  0xbf   : > { %v232_v25 = vpop.permute.xlu0 %231 }
  0xc0   : > { %v234_v26 = vmul.f32 %v232_v25, %v228_v24 }
  0xc3   : > { %v238_v27 = vpop.permute.xlu0 %237 }
  0xc4   : > { %v240_v28 = vadd.f32 %v238_v27, %v234_v26 }
  0xc6   : > { %241 = vst [vmem:[%s203_s21] sm:$0xf] %v240_v28 }
  0xc7   : > { %483 = shalt.err (!%p480_p6)
}
  0xc8   : > { %s484_s7 = scalar_lea.hbm %s743_s24, 64  ;;  %s488_s27 = scalar_lea.hbm %s800_s3, 256 }
  0xc9   : > { %p485_p3 = scmp.ne.s32.totalorder %s743_s24, %s484_s7  ;;  %p489_p1 = scmp.lt.u32.totalorder %s743_s24, %s800_s3 }
  0xca   : > { %p490_p2 = scmp.lt.u32.totalorder %s488_s27, %s484_s7  ;;  %p492_p8 = scmp.lt.u32.totalorder %s484_s7, %s743_s24 }
  0xcb   : > { %p486_p10 = pnand %p485_p3, %p809_p9 }
  0xcc   : > { %p491_p5 = por %p490_p2, %p489_p1 }
  0xcd   : > { %p487_p11 = pneg %p486_p10 }
  0xce   : > { %p493_p12 = por %p492_p8, %p491_p5 }
  0xd0   : > { %p494_p0 = pnand %p493_p12, %p487_p11 }
  0xd2   : > { %497 = shalt.err (!%p494_p0)
}
  0xd3   : > { %360 = dma.vmem_to_hbm [thread:$0]  (%p809_p9), %s745_s25, 64, %s743_s24, %s243_s15  }
  0xd4 PF: > { %p371_p7 = scmp.ge.s32.totalorder %s568_s19, 2  ;;  %s270_s21 = sand.u32 1, %s540_s12  }
  0xd5   : > { %p810_p13 = scmp.ne.s32.totalorder %s805_s4, 0  ;;  %s271_s26 = scalar_lea.sflag [#allocation4], %s270_s21 }
  0xd7   : > { %p367_p4 = pnand %p371_p7, %p810_p13 }
  0xd9   : > { %535 = dma.done.wait (!%p367_p4), %s271_s26, 64  }
  0xda   : > { %537 = vsyncadd (!%p367_p4), %s271_s26, 4294967232  ;;  %s19_s19 = sadd.s32 1, %s568_s19   ;;  %s811_s12 = smov %s544_s13 }
  0xdb   : > { %p16_p6 = scmp.ge.s32.totalorder %s19_s19, 6   ;;  %s812_s13 = smov %s548_s14 }
  0xdc   : > { %s813_s14 = smov %s671_s6  ;;  %s814_s15 = smov %s560_s17 }
  0xdd   : > { %s815_s16 = smov %s564_s18  ;;  %s816_s17 = smov %s819_s22 }
  0xde   : > { %s817_s18 = smov %s823_s23  ;;  %18 = sbr.rel (!%p16_p6) target bundleno = 7 (0x7), region = 77 }
  0xe5   :  { %276 = vsyncpa [#allocation3], 1 }
  0xe6   :  { %278 = vsyncpa [#allocation3 + $0x1], 1 }
  0xe7   :  { %279 = vsyncpa [#allocation4], 1 }
  0xe8   :  { %281 = vsyncpa [#allocation4 + $0x1], 1 }

</bundles_post_ra>
